<compile_context>
chip_gen: v5e
topology: v5e:2x2
jax: 0.10.0
libtpu: 0.0.40
codegen_flags: <defaults>
</compile_context>

<pallas_src>
import functools
import math

import jax
import jax.numpy as jnp
from jax.experimental import pallas as pl
from jax.experimental.pallas import tpu as pltpu

NUM_FREQ = 128
HIDDEN = 512
BN_EPS = 1e-5
TWO_PI = 2.0 * math.pi


def _round_up(x, m):
    return (x + m - 1) // m * m


def _fourier_linear_stats_kernel(x_ref, fw_ref, fb_ref, w1_ref, b1_ref,
                                 h_ref, stats_ref, *, n_true, tm):
    i = pl.program_id(0)

    # Phase: f = x0*fw[0] + x1*fw[1] + x2*fw[2] + fb.  (2*pi and the -0.5 input
    # shift were folded into fw/fb in the wrapper.)  K=3 -> VPU, not MXU.
    x = x_ref[...]                                          # (tm, 3) f32
    f = (x[:, 0:1] * fw_ref[0:1, :]
         + x[:, 1:2] * fw_ref[1:2, :]
         + x[:, 2:3] * fw_ref[2:3, :]
         + fb_ref[...])                                     # (tm, NUM_FREQ)

    # Fourier features; concat at a 128-lane boundary is layout-free, so one
    # K=256 MXU dot (full depth on v6e/v7x) with bf16 operands / f32 acc.
    feat = jnp.concatenate([jnp.sin(f), jnp.cos(f)],
                           axis=-1).astype(jnp.bfloat16)    # (tm, 2*NUM_FREQ)
    h = (jnp.dot(feat, w1_ref[...], preferred_element_type=jnp.float32)
         + b1_ref[...])                                     # (tm, HIDDEN) f32

    # bf16 store of the activations (halves the h round-trip HBM traffic).
    h_ref[...] = h.astype(jnp.bfloat16)

    # Per-block BatchNorm partial statistics (sum, sum of squares) from the f32
    # value; mask padded rows so statistics cover only the true batch.
    row = i * tm + jax.lax.broadcasted_iota(jnp.int32, (tm, 1), 0)
    valid = (row < n_true).astype(jnp.float32)              # (tm, 1)
    hv = h * valid
    stats_ref[...] = jnp.concatenate(
        [jnp.sum(hv, axis=0, keepdims=True),
         jnp.sum(hv * hv, axis=0, keepdims=True)], axis=0)  # (2, HIDDEN)


def _bn_relu_linear_kernel(h_ref, scale_ref, shift_ref, w2_ref, b2_ref, o_ref):
    # BN scale/shift precomputed in the wrapper; just normalize + ReLU + dot.
    h = h_ref[...].astype(jnp.float32)                      # (tm, HIDDEN)
    r = jnp.maximum(h * scale_ref[...] + shift_ref[...], 0.0).astype(jnp.bfloat16)
    o_ref[...] = (jnp.dot(r, w2_ref[...], preferred_element_type=jnp.float32)
                  + b2_ref[...])


def position_embedder(x, params, *, tm=None):
    """x: (N, 3) f32 in [0, 1].  Returns (N, 512) f32 (training-mode BN)."""
    n = x.shape[0]
    fw, fb, w1, b1, gamma, beta, w2, b2 = params

    # Fold the -0.5 shift and the 2*pi scale into the (non-learnable) frequency
    # layer:  sin/cos(2*pi*((x - 0.5) @ fw + fb)) == sin/cos(x @ fw' + fb').
    fw_f = (TWO_PI * fw).astype(jnp.float32)                               # (3, NUM_FREQ)
    fb_f = (TWO_PI * (fb - 0.5 * jnp.sum(fw, axis=0, keepdims=True))
            ).astype(jnp.float32)                                          # (1, NUM_FREQ)

    # bf16 weights for native-rate MXU (and half the weight VMEM).
    w1b = w1.astype(jnp.bfloat16)                                          # (2*NUM_FREQ, HIDDEN)
    w2b = w2.astype(jnp.bfloat16)                                          # (HIDDEN, HIDDEN)

    # Row tile: multiple of 16 (bf16 sublane packing), up to 1024.  Per-step
    # VMEM (double-buffered x/h/out tiles + resident weights) stays well under
    # the default scoped-VMEM budget on v5e/v6e/v7x.
    if tm is None:
        tm = min(1024, _round_up(max(n, 16), 16))
    n_pad = _round_up(n, tm)
    if n_pad != n:
        x = jnp.pad(x, ((0, n_pad - n), (0, 0)))
    grid_n = n_pad // tm

    row_spec = lambda w: pl.BlockSpec((tm, w), lambda i: (i, 0))
    const_spec = lambda shape: pl.BlockSpec(shape, lambda i: (0,) * len(shape))

    # ---- Pass 1: Fourier features + Linear(2*NUM_FREQ, 512) + partial stats.
    cost1 = pl.CostEstimate(
        flops=2 * n_pad * (2 * NUM_FREQ) * HIDDEN,
        transcendentals=2 * n_pad * NUM_FREQ,
        bytes_accessed=(n_pad * 3 * 4                    # x
                        + 2 * NUM_FREQ * HIDDEN * 2      # w1 (bf16)
                        + n_pad * HIDDEN * 2             # h (bf16)
                        + grid_n * 2 * HIDDEN * 4        # partial stats
                        + 2 * HIDDEN * 4),
    )
    h, partial_stats = pl.pallas_call(
        functools.partial(_fourier_linear_stats_kernel, n_true=n, tm=tm),
        out_shape=(jax.ShapeDtypeStruct((n_pad, HIDDEN), jnp.bfloat16),
                   jax.ShapeDtypeStruct((grid_n, 2, HIDDEN), jnp.float32)),
        grid=(grid_n,),
        in_specs=[
            row_spec(3),
            const_spec((3, NUM_FREQ)), const_spec((1, NUM_FREQ)),
            const_spec((2 * NUM_FREQ, HIDDEN)), const_spec((1, HIDDEN)),
        ],
        out_specs=(row_spec(HIDDEN),
                   pl.BlockSpec((None, 2, HIDDEN), lambda i: (i, 0, 0))),
        compiler_params=pltpu.CompilerParams(
            dimension_semantics=("parallel",)),   # per-block stats -> megacore OK
        cost_estimate=cost1,
    )(x, fw_f, fb_f, w1b, b1)

    # ---- Tiny XLA reduction: global batch stats -> BN scale/shift (f32).
    sums = jnp.sum(partial_stats, axis=0)                   # (2, HIDDEN)
    inv_n = jnp.float32(1.0 / n)
    mean = sums[0:1, :] * inv_n                             # (1, HIDDEN)
    var = jnp.maximum(sums[1:2, :] * inv_n - mean * mean, 0.0)
    scale = gamma * jax.lax.rsqrt(var + BN_EPS)             # (1, HIDDEN)
    shift = beta - mean * scale                             # (1, HIDDEN)

    # ---- Pass 2: BatchNorm(batch stats) + ReLU + Linear(512, 512).
    cost2 = pl.CostEstimate(
        flops=2 * n_pad * HIDDEN * HIDDEN,
        transcendentals=0,
        bytes_accessed=(n_pad * HIDDEN * 2               # h (bf16)
                        + HIDDEN * HIDDEN * 2            # w2 (bf16)
                        + n_pad * HIDDEN * 4             # out
                        + 3 * HIDDEN * 4),
    )
    out = pl.pallas_call(
        _bn_relu_linear_kernel,
        out_shape=jax.ShapeDtypeStruct((n_pad, HIDDEN), jnp.float32),
        grid=(grid_n,),
        in_specs=[
            row_spec(HIDDEN),
            const_spec((1, HIDDEN)), const_spec((1, HIDDEN)),
            const_spec((HIDDEN, HIDDEN)), const_spec((1, HIDDEN)),
        ],
        out_specs=row_spec(HIDDEN),
        compiler_params=pltpu.CompilerParams(
            dimension_semantics=("parallel",)),    # independent rows -> megacore
        cost_estimate=cost2,
    )(h, scale, shift, w2b, b2)

    return out[:n] if n_pad != n else out


def position_embedder_ref(x, params):
    """Pure-JAX f32 reference with the same (training-mode BN) semantics."""
    fw, fb, w1, b1, gamma, beta, w2, b2 = params
    f = (x - 0.5) @ fw + fb
    feat = jnp.concatenate([jnp.sin(TWO_PI * f), jnp.cos(TWO_PI * f)], axis=1)
    h = feat @ w1 + b1
    mean = jnp.mean(h, axis=0, keepdims=True)
    var = jnp.mean((h - mean) ** 2, axis=0, keepdims=True)
    hn = (h - mean) * jax.lax.rsqrt(var + BN_EPS) * gamma + beta
    return jnp.maximum(hn, 0.0) @ w2 + b2


def init_params(key, num_freq=NUM_FREQ, sigma=1.0):
    k_freq, k_w1, k_b1, k_w2, k_b2 = jax.random.split(key, 5)

    # freq: Linear(3, num_freq); weight ~ N(0, sigma), bias = 0 (non-learnable).
    fw = (sigma * jax.random.normal(k_freq, (num_freq, 3), jnp.float32)).T   # (3, num_freq)
    fb = jnp.zeros((1, num_freq), jnp.float32)

    # Linear(2*num_freq, 512): PyTorch default U(-1/sqrt(fan_in), 1/sqrt(fan_in)).
    fan1 = 2 * num_freq
    bound1 = 1.0 / math.sqrt(fan1)
    w1 = jax.random.uniform(k_w1, (fan1, HIDDEN), jnp.float32, -bound1, bound1)
    b1 = jax.random.uniform(k_b1, (1, HIDDEN), jnp.float32, -bound1, bound1)

    # BatchNorm1d(512): gamma = 1, beta = 0.
    gamma = jnp.ones((1, HIDDEN), jnp.float32)
    beta = jnp.zeros((1, HIDDEN), jnp.float32)

    # Linear(512, 512).
    bound2 = 1.0 / math.sqrt(HIDDEN)
    w2 = jax.random.uniform(k_w2, (HIDDEN, HIDDEN), jnp.float32, -bound2, bound2)
    b2 = jax.random.uniform(k_b2, (1, HIDDEN), jnp.float32, -bound2, bound2)

    return fw, fb, w1, b1, gamma, beta, w2, b2


if __name__ == "__main__":
    key = jax.random.PRNGKey(0)
    k_params, k_x = jax.random.split(key)

    params = init_params(k_params)

    # Input positions in [0, 1]^3 (the module asserts x - 0.5 in [-0.5, 0.5]).
    N = 8
    x = jax.random.uniform(k_x, (N, 3), jnp.float32, 0.0, 1.0)

    out = jax.block_until_ready(position_embedder(x, params))

    assert out.shape == (N, HIDDEN), out.shape
    assert out.dtype == jnp.float32
    assert bool(jnp.all(jnp.isfinite(out)))

    ref = position_embedder_ref(x, params)
    err = float(jnp.max(jnp.abs(out - ref)))
    tol = 5e-2 + 5e-2 * float(jnp.max(jnp.abs(ref)))   # bf16 operands / bf16 h store
    assert err < tol, (err, tol)

    print("KERNEL_OK")
</pallas_src>

<mosaic_0001>
module attributes {stable_mosaic.version = 11 : i64} {
  func.func @_fourier_linear_stats_kernel(%arg0: i32, %arg1: memref<16x3xf32, #tpu.memory_space<vmem>>, %arg2: memref<3x128xf32, #tpu.memory_space<vmem>>, %arg3: memref<1x128xf32, #tpu.memory_space<vmem>>, %arg4: memref<256x512xbf16, #tpu.memory_space<vmem>>, %arg5: memref<1x512xf32, #tpu.memory_space<vmem>>, %arg6: memref<16x512xbf16, #tpu.memory_space<vmem>>, %arg7: memref<1x2x512xf32, #tpu.memory_space<vmem>>) attributes {dimension_semantics = [#tpu.dimension_semantics<parallel>], iteration_bounds = array<i64: 1>, scalar_prefetch = 0 : i64, scratch_operands = 0 : i64, tpu.core_type = #tpu.core_type<tc>, window_params = [{transform_indices = @transform_0, window_bounds = array<i64: 16, 3>}, {pipeline_mode = #tpu.pipeline_mode<synchronous>, transform_indices = @transform_1, window_bounds = array<i64: 3, 128>}, {pipeline_mode = #tpu.pipeline_mode<synchronous>, transform_indices = @transform_2, window_bounds = array<i64: 1, 128>}, {pipeline_mode = #tpu.pipeline_mode<synchronous>, transform_indices = @transform_3, window_bounds = array<i64: 256, 512>}, {pipeline_mode = #tpu.pipeline_mode<synchronous>, transform_indices = @transform_4, window_bounds = array<i64: 1, 512>}, {transform_indices = @transform_5, window_bounds = array<i64: 16, 512>}, {transform_indices = @transform_6, window_bounds = array<i64: 1, 2, 512>}]} {
    %c0 = arith.constant 0 : index
    %c0_0 = arith.constant 0 : index
    %0 = vector.load %arg1[%c0, %c0_0] : memref<16x3xf32, #tpu.memory_space<vmem>>, vector<16x3xf32>
    %1 = vector.extract_strided_slice %0 {offsets = [0, 0], sizes = [16, 1], strides = [1, 1]} : vector<16x3xf32> to vector<16x1xf32>
    %c0_1 = arith.constant 0 : index
    %c0_2 = arith.constant 0 : index
    %2 = vector.load %arg2[%c0_1, %c0_2] : memref<3x128xf32, #tpu.memory_space<vmem>>, vector<1x128xf32>
    %3 = vector.broadcast %1 : vector<16x1xf32> to vector<16x128xf32>
    %4 = vector.broadcast %2 : vector<1x128xf32> to vector<16x128xf32>
    %5 = arith.mulf %3, %4 : vector<16x128xf32>
    %6 = vector.extract_strided_slice %0 {offsets = [0, 1], sizes = [16, 1], strides = [1, 1]} : vector<16x3xf32> to vector<16x1xf32>
    %c1 = arith.constant 1 : index
    %c0_3 = arith.constant 0 : index
    %7 = vector.load %arg2[%c1, %c0_3] : memref<3x128xf32, #tpu.memory_space<vmem>>, vector<1x128xf32>
    %8 = vector.broadcast %6 : vector<16x1xf32> to vector<16x128xf32>
    %9 = vector.broadcast %7 : vector<1x128xf32> to vector<16x128xf32>
    %10 = arith.mulf %8, %9 : vector<16x128xf32>
    %11 = arith.addf %5, %10 : vector<16x128xf32>
    %12 = vector.extract_strided_slice %0 {offsets = [0, 2], sizes = [16, 1], strides = [1, 1]} : vector<16x3xf32> to vector<16x1xf32>
    %c2 = arith.constant 2 : index
    %c0_4 = arith.constant 0 : index
    %13 = vector.load %arg2[%c2, %c0_4] : memref<3x128xf32, #tpu.memory_space<vmem>>, vector<1x128xf32>
    %14 = vector.broadcast %12 : vector<16x1xf32> to vector<16x128xf32>
    %15 = vector.broadcast %13 : vector<1x128xf32> to vector<16x128xf32>
    %16 = arith.mulf %14, %15 : vector<16x128xf32>
    %17 = arith.addf %11, %16 : vector<16x128xf32>
    %c0_5 = arith.constant 0 : index
    %c0_6 = arith.constant 0 : index
    %18 = vector.load %arg3[%c0_5, %c0_6] : memref<1x128xf32, #tpu.memory_space<vmem>>, vector<1x128xf32>
    %19 = vector.broadcast %18 : vector<1x128xf32> to vector<16x128xf32>
    %20 = arith.addf %17, %19 : vector<16x128xf32>
    %21 = math.sin %20 : vector<16x128xf32>
    %22 = math.cos %20 : vector<16x128xf32>
    %23 = tpu.concatenate %21, %22 in 1 : vector<16x128xf32>, vector<16x128xf32> -> vector<16x256xf32>
    %24 = arith.truncf %23 : vector<16x256xf32> to vector<16x256xbf16>
    %c0_7 = arith.constant 0 : index
    %c0_8 = arith.constant 0 : index
    %25 = vector.load %arg4[%c0_7, %c0_8] : memref<256x512xbf16, #tpu.memory_space<vmem>>, vector<256x512xbf16>
    %cst = arith.constant dense<0.000000e+00> : vector<16x512xf32>
    %26 = tpu.matmul %24, %25, %cst {dimension_numbers = #tpu.dot_dimension_numbers<[1], [0], [0], [1], [0, 0, 1, 1], [], []>} : vector<16x256xbf16>, vector<256x512xbf16>, vector<16x512xf32> -> vector<16x512xf32>
    %c0_9 = arith.constant 0 : index
    %c0_10 = arith.constant 0 : index
    %27 = vector.load %arg5[%c0_9, %c0_10] : memref<1x512xf32, #tpu.memory_space<vmem>>, vector<1x512xf32>
    %28 = vector.broadcast %27 : vector<1x512xf32> to vector<16x512xf32>
    %29 = arith.addf %26, %28 : vector<16x512xf32>
    %30 = arith.truncf %29 : vector<16x512xf32> to vector<16x512xbf16>
    %c0_11 = arith.constant 0 : index
    %c0_12 = arith.constant 0 : index
    %31 = vector.load %arg6[%c0_11, %c0_12] : memref<16x512xbf16, #tpu.memory_space<vmem>>, vector<16x512xbf16>
    tpu.vector_store %arg6[%c0_11, %c0_12], %30 {strides = array<i32>} : memref<16x512xbf16, #tpu.memory_space<vmem>>, vector<16x512xbf16>,
    %c16_i32 = arith.constant 16 : i32
    %32 = arith.muli %arg0, %c16_i32 : i32
    %33 = tpu.iota {dimensions = array<i32: 0>} : vector<16x1xi32>
    %34 = vector.broadcast %32 : i32 to vector<16x1xi32>
    %35 = arith.addi %34, %33 : vector<16x1xi32>
    %c8_i32 = arith.constant 8 : i32
    %36 = vector.broadcast %c8_i32 : i32 to vector<16x1xi32>
    %37 = arith.cmpi slt, %35, %36 : vector<16x1xi32>
    %38 = arith.extui %37 : vector<16x1xi1> to vector<16x1xi32>
    %39 = arith.sitofp %38 : vector<16x1xi32> to vector<16x1xf32>
    %40 = vector.broadcast %39 : vector<16x1xf32> to vector<16x512xf32>
    %41 = arith.mulf %29, %40 : vector<16x512xf32>
    %cst_13 = arith.constant dense<0.000000e+00> : vector<512xf32>
    %42 = vector.multi_reduction <add>, %41, %cst_13 [0] : vector<16x512xf32> to vector<512xf32>
    %43 = vector.shape_cast %42 : vector<512xf32> to vector<1x512xf32>
    %44 = arith.mulf %41, %41 : vector<16x512xf32>
    %cst_14 = arith.constant dense<0.000000e+00> : vector<512xf32>
    %45 = vector.multi_reduction <add>, %44, %cst_14 [0] : vector<16x512xf32> to vector<512xf32>
    %46 = vector.shape_cast %45 : vector<512xf32> to vector<1x512xf32>
    %47 = tpu.concatenate %43, %46 in 0 : vector<1x512xf32>, vector<1x512xf32> -> vector<2x512xf32>
    %c0_15 = arith.constant 0 : index
    %c0_16 = arith.constant 0 : index
    %c0_17 = arith.constant 0 : index
    %48 = vector.load %arg7[%c0_15, %c0_16, %c0_17] : memref<1x2x512xf32, #tpu.memory_space<vmem>>, vector<1x2x512xf32>
    %49 = vector.shape_cast %48 : vector<1x2x512xf32> to vector<2x512xf32>
    %50 = vector.shape_cast %47 : vector<2x512xf32> to vector<1x2x512xf32>
    tpu.vector_store %arg7[%c0_15, %c0_16, %c0_17], %50 {strides = array<i32>} : memref<1x2x512xf32, #tpu.memory_space<vmem>>, vector<1x2x512xf32>,
    return
  }
  func.func @transform_0(%arg0: i32) -> (i32, i32) {
    %c0_i32 = arith.constant 0 : i32
    %c0_i32_0 = arith.constant 0 : i32
    return %arg0, %c0_i32 : i32, i32
  }
  func.func @transform_1(%arg0: i32) -> (i32, i32) {
    %c0_i32 = arith.constant 0 : i32
    %c0_i32_0 = arith.constant 0 : i32
    %c0_i32_1 = arith.constant 0 : i32
    return %c0_i32, %c0_i32_0 : i32, i32
  }
  func.func @transform_2(%arg0: i32) -> (i32, i32) {
    %c0_i32 = arith.constant 0 : i32
    %c0_i32_0 = arith.constant 0 : i32
    %c0_i32_1 = arith.constant 0 : i32
    return %c0_i32, %c0_i32_0 : i32, i32
  }
  func.func @transform_3(%arg0: i32) -> (i32, i32) {
    %c0_i32 = arith.constant 0 : i32
    %c0_i32_0 = arith.constant 0 : i32
    %c0_i32_1 = arith.constant 0 : i32
    return %c0_i32, %c0_i32_0 : i32, i32
  }
  func.func @transform_4(%arg0: i32) -> (i32, i32) {
    %c0_i32 = arith.constant 0 : i32
    %c0_i32_0 = arith.constant 0 : i32
    %c0_i32_1 = arith.constant 0 : i32
    return %c0_i32, %c0_i32_0 : i32, i32
  }
  func.func @transform_5(%arg0: i32) -> (i32, i32) {
    %c0_i32 = arith.constant 0 : i32
    %c0_i32_0 = arith.constant 0 : i32
    return %arg0, %c0_i32 : i32, i32
  }
  func.func @transform_6(%arg0: i32) -> (i32, i32, i32) {
    %c0_i32 = arith.constant 0 : i32
    %c0_i32_0 = arith.constant 0 : i32
    %c0_i32_1 = arith.constant 0 : i32
    return %arg0, %c0_i32, %c0_i32_0 : i32, i32, i32
  }
}

</mosaic_0001>

<bundles_post_ra>
// kernel: tpu_custom_call.1
= control target key start
LH: loop header
LB: loop body
LE: loop exit
PB: predicated region body
PF: predicated region fallthrough
CT: control target
= control target key end

     0   :  { %12 = vsyncpa [#allocation3], 0  ;;  %s2338_s0 = inlined_call_operand.vmem [shape: f32[16,3], index: 0, kind: input, shape index: {}]   ;;  %s2339_s1 = inlined_call_operand.vmem [shape: f32[3,128], index: 1, kind: input, shape index: {}]   ;;  %s2340_s2 = inlined_call_operand.vmem [shape: f32[1,128], index: 2, kind: input, shape index: {}]   ;;  %s2341_s3 = inlined_call_operand.hbm [shape: bf16[256,512], index: 3, kind: input, shape index: {}]   ;;  %s2342_s4 = inlined_call_operand.vmem [shape: f32[1,512], index: 4, kind: input, shape index: {}]   ;;  %s2343_s5 = inlined_call_operand.hbm [shape: bf16[16,512], index: 5, kind: output, shape index: {0}]   ;;  %s2344_s6 = inlined_call_operand.hbm [shape: f32[1,2,512], index: 6, kind: output, shape index: {1}]  }
   0x1   :  { %13 = vsyncpa [#allocation4], 0 }
   0x2   :  { %14 = vsyncpa [#allocation7], 0  ;;  %s25_s23 = sshll.u32 %s2341_s3, 4  ;;  %s1796_s24 = smov [#allocation2]   ;;  %s26_s23 = int_to_ptr.hbm [resolvable:$true] %s25_s23 }
   0x3   :  { %s27_s25 = sshll.u32 %s1796_s24, 4  ;;  %s1797_s26 = smov 256   ;;  %s28_s25 = int_to_ptr.vmem [resolvable:$true] %s27_s25 }
   0x4   :  { %s1798_s27 = smov 16  }
   0x5   :  { %33 = dma.hbm_to_vmem [thread:$0]  %s26_s23, 8192, %s28_s25, [#allocation3], %s1797_s26, %s1797_s26, %s1798_s27  }
   0x6   :  { %1790 = dma.done.wait [#allocation3], 8192  }
   0x7   :  { %1791 = vsyncadd [#allocation3], 4294959104  ;;  %v1799_v0 = vmov 1   ;;  %v1800_v1 = vmov 0   ;;  %v1801_v2 = vmov 2   ;;  %v40_v3 = vld [vmem:[%s2338_s0] sm:$0xff] }
   0x8   :  { %1711 = vset.pattern.permute.xlu1 %v1799_v0  ;;  %1710 = vset.pattern.permute.xlu0 %v1800_v1  ;;  %v41_v4 = vld [vmem:[%s2338_s0 + $0x8] sm:$0xff]  ;;  %v1714_v5 = vld [vmem:[%s2339_s1 + $0x2] ss:$0 sm:$0xff]  ;;  %v1715_v6 = vld [vmem:[%s2339_s1 + $0x1] ss:$0 sm:$0xff]  ;;  %s1335_s17 = sshll.u32 %s2343_s5, 4  ;;  %s1336_s17 = int_to_ptr.hbm [resolvable:$true] %s1335_s17 }
   0x9   :  { %1712 = vset.pattern.permute.xlu2 %v1801_v2  ;;  %58 = vperm.xlu1 %1711, %v40_v3   ;;  %v1716_v7 = vld [vmem:[%s2339_s1] ss:$0 sm:$0xff]  ;;  %v1802_v40 = vmov 2131351028   ;;  %v1803_v42 = vmov 2102212464  }
   0xa   :  { %45 = vperm.xlu0 %1710, %v40_v3   ;;  %72 = vperm.xlu2 %1712, %v40_v3   ;;  %v1717_v14 = vld [vmem:[%s2340_s2] ss:$0 sm:$0xff]  ;;  %v1662_v46 = vld [vmem:[#allocation2 + $0xec] sm:$0xf0]  ;;  %v1804_v47 = vmov 2475754826  }
   0xb   :  { %v1490_v45 = vld [vmem:[#allocation2 + $0xe0] sm:$0xf]  ;;  %v1805_v49 = vmov 920167782   ;;  %v1806_v52 = vmov 1326507024  }
   0xc   :  { %v1807_v58 = vmov 683565275   ;;  %v1491_v62 = vor.u32 %v1662_v46, %v1490_v45  ;;  %s1809_s5 = smov [#allocation6]   ;;  %s1349_s21 = sshll.u32 %s2344_s6, 4  ;;  %s1350_s21 = int_to_ptr.hbm [resolvable:$true] %s1349_s21 }
   0xd   :  { %s1347_s18 = sshll.u32 %s1809_s5, 4  ;;  %s1348_s18 = int_to_ptr.vmem [resolvable:$true] %s1347_s18 }
   0xe   :  { %1104 = vmatpush.bf16.msra.mxu0 %v1491_v62  ;;  %v1476_v62 = vld [vmem:[#allocation2 + $0xd0] sm:$0xf0] }
  0x11   :  { %62 = vperm.xlu1 %1711, %v41_v4  }
  0x12   :  { %50 = vperm.xlu0 %1710, %v41_v4   ;;  %76 = vperm.xlu2 %1712, %v41_v4  }
  0x1a   :  { %1713 = vset.pattern.permute.xlu0 %v1801_v2 }
  0x64   :  { %v73_v8 = vpop.permute.xlu2 %72 }
  0x65   :  { %v80_v11 = vmul.f32 %v1714_v5, %v73_v8  ;;  %v1694_v8 = vld [vmem:[#allocation2 + $0x1ec] sm:$0xf0] }
  0x6c   :  { %v77_v21 = vpop.permute.xlu2 %76 }
  0x6d   :  { %v81_v25 = vmul.f32 %v1714_v5, %v77_v21  ;;  %v1620_v21 = vld [vmem:[#allocation2 + $0x1f0] sm:$0xf0] }
  0x7b   :  { %v59_v9 = vpop.permute.xlu1 %58 }
  0x7c   :  { %v46_v10 = vpop.permute.xlu0 %45  ;;  %v66_v12 = vmul.f32 %v1715_v6, %v59_v9 }
  0x7d   :  { %v54_v13 = vmul.f32 %v1716_v7, %v46_v10 }
  0x7f   :  { %v68_v15 = vadd.f32 %v66_v12, %v54_v13  ;;  %v1660_v13 = vld [vmem:[#allocation2 + $0xe4] sm:$0xf] }
  0x81   :  { %v82_v16 = vadd.f32 %v80_v11, %v68_v15  ;;  %v1692_v15 = vld [vmem:[#allocation2 + $0x1e4] sm:$0xf] }
  0x83   :  { %v1870_v17 = vadd.f32 %v1717_v14, %v82_v16  ;;  %v63_v18 = vpop.permute.xlu1 %62 }
  0x84   :  { %v51_v19 = vpop.permute.xlu0 %50  ;;  %v67_v22 = vmul.f32 %v1715_v6, %v63_v18 }
  0x85   :  { %v93_v20 = vand.u32 2139095040, %v1870_v17  ;;  %v55_v23 = vmul.f32 %v1716_v7, %v51_v19  ;;  %v90_v31 = vand.u32 2147483647, %v1870_v17  ;;  %v1618_v7 = vld [vmem:[#allocation2 + $0x1e0] sm:$0xf] }
  0x87   :  { %v94_v24 = vshrl.u32 %v93_v20, 23  ;;  %v69_v26 = vadd.f32 %v67_v22, %v55_v23  ;;  %v97_v35 = vand.u32 8388607, %v90_v31  ;;  %v1619_v20 = vor.u32 %v1694_v8, %v1618_v7  ;;  %v1474_v22 = vld [vmem:[#allocation2 + $0xc0] sm:$0xf] }
  0x88   :  { %v1658_v23 = vld [vmem:[#allocation2 + $0xcc] sm:$0xf0]  ;;  %v1604_v7 = vld [vmem:[#allocation2 + $0x1d0] sm:$0xf0]  ;;  %v1458_v8 = vld [vmem:[#allocation2 + $0xa0] sm:$0xf] }
  0x89   :  { %v1364_v27 = vadd.s32 4294967169, %v94_v24  ;;  %v83_v28 = vadd.f32 %v81_v25, %v69_v26  ;;  %v98_v54 = vor.u32 8388608, %v97_v35  ;;  %v1602_v24 = vld [vmem:[#allocation2 + $0x1c0] sm:$0xf]  ;;  %v1690_v25 = vld [vmem:[#allocation2 + $0x1cc] sm:$0xf0]  ;;  %1118 = vmatpush.bf16.msra.mxu1 %v1619_v20 }
  0x8a   :  { %v1603_v35 = vor.u32 %v1690_v25, %v1602_v24 }
  0x8b   :  { %v100_v29 = vadd.s32 1, %v1364_v27  ;;  %v1873_v30 = vadd.f32 %v1717_v14, %v83_v28  ;;  %v1912_v9 = vshll.u32 %v98_v54, 8  ;;  %v1492_v14 = vld [vmem:[#allocation2 + $0xf0] sm:$0xf0] }
  0x8d   :  { %vm101_vm0 = vcmp.gt.s32.totalorder %v100_v29, 0  ;;  %v248_v33 = vand.u32 2139095040, %v1873_v30  ;;  %v245_v38 = vand.u32 2147483647, %v1873_v30  ;;  %v1935_v28 = vand.u32 65535, %v1912_v9  ;;  %1119 = vmatpush.bf16.msra.mxu1 %v1603_v35 }
  0x8e   :  { %v102_v32 = vsel %vm101_vm0, %v100_v29, 0 }
  0x8f   :  { %v104_v34 = vand.u32 31, %v102_v32  ;;  %v249_v37 = vshrl.u32 %v248_v33, 23  ;;  %v1882_v39 = vshrl.u32 %v102_v32, 5  ;;  %v252_v2 = vand.u32 8388607, %v245_v38 }
  0x90   :  { %v1495_v32 = vor.u32 %v1660_v13, %v1492_v14  ;;  %v1623_v33 = vor.u32 %v1692_v15, %v1620_v21  ;;  %v1586_v13 = vld [vmem:[#allocation2 + $0x1a0] sm:$0xf]  ;;  %v1686_v14 = vld [vmem:[#allocation2 + $0x1ac] sm:$0xf0]  ;;  %v1652_v15 = vld [vmem:[#allocation2 + $0xa4] sm:$0xf] }
  0x91   :  { %v1879_v36 = vsub.s32 32, %v104_v34  ;;  %v116_v44 = vshll.u32 %v1803_v42, %v104_v34  ;;  %v119_v51 = vshll.u32 %v1805_v49, %v104_v34  ;;  %v110_v55 = vshll.u32 %v1804_v47, %v104_v34 }
  0x92   :  { %v113_v56 = vshll.u32 %v1802_v40, %v104_v34  ;;  %v1367_v57 = vadd.s32 4294967169, %v249_v37  ;;  %v107_v59 = vshll.u32 %v1807_v58, %v104_v34  ;;  %vm125_vm1 = vcmp.lt.s32.totalorder %v1882_v39, 4  ;;  %1132 = vmatpush.bf16.msra.mxu2 %v1495_v32  ;;  %1146 = vmatpush.bf16.msra.mxu3 %v1623_v33  ;;  %v1442_v33 = vld [vmem:[#allocation2 + $0x80] sm:$0xf] }
  0x93   :  { %v111_v41 = vshrl.u32 %v1802_v40, %v1879_v36  ;;  %v114_v43 = vshrl.u32 %v1803_v42, %v1879_v36  ;;  %v108_v48 = vshrl.u32 %v1804_v47, %v1879_v36  ;;  %v117_v50 = vshrl.u32 %v1805_v49, %v1879_v36 }
  0x94   :  { %v120_v53 = vshrl.u32 %v1806_v52, %v1879_v36  ;;  %v255_v5 = vadd.s32 1, %v1367_v57  ;;  %vm122_vm2 = vcmp.lt.s32.totalorder %v1882_v39, 1  ;;  %vm124_vm3 = vcmp.lt.s32.totalorder %v1882_v39, 3 }
  0x95   :  { %v118_v60 = vor.u32 %v117_v50, %v116_v44  ;;  %v1899_v63 = vor.u32 %v111_v41, %v110_v55  ;;  %v115_v0 = vor.u32 %v114_v43, %v113_v56  ;;  %v1904_v3 = vor.u32 %v108_v48, %v107_v59 }
  0x96   :  { %v121_v61 = vor.u32 %v120_v53, %v119_v51  ;;  %vm256_vm4 = vcmp.gt.s32.totalorder %v255_v5, 0  ;;  %vm123_vm5 = vcmp.lt.s32.totalorder %v1882_v39, 2  ;;  %v253_v12 = vor.u32 8388608, %v252_v2 }
  0x97   :  { %v131_v6 = vsel %vm125_vm1, %v118_v60, 920167782  ;;  %v134_v10 = vsel %vm122_vm2, %v1899_v63, %v115_v0  ;;  %v130_v16 = vsel %vm122_vm2, %v1904_v3, %v1899_v63  ;;  %v257_v19 = vsel %vm256_vm4, %v255_v5, 0 }
  0x98   :  { %v135_v4 = vsel %vm125_vm1, %v121_v61, 1326507024  ;;  %v132_v18 = vsel %vm124_vm3, %v115_v0, %v131_v6  ;;  %v259_v29 = vand.u32 31, %v257_v19  ;;  %v1475_v34 = vor.u32 %v1658_v23, %v1474_v22  ;;  %v1656_v61 = vld [vmem:[#allocation2 + $0xc4] sm:$0xf] }
  0x99   :  { %v136_v11 = vsel %vm124_vm3, %v118_v60, %v135_v4  ;;  %v1932_v27 = vsel %vm123_vm5, %v130_v16, %v132_v18  ;;  %v1938_v37 = vshrl.u32 %v1912_v9, 16  ;;  %v1943_v44 = vshll.u32 %v253_v12, 8  ;;  %v1688_v4 = vld [vmem:[#allocation2 + $0x1c4] sm:$0xf]  ;;  %v1460_v18 = vld [vmem:[#allocation2 + $0xb0] sm:$0xf0] }
  0x9a   :  { %v1928_v26 = vsel %vm123_vm5, %v134_v10, %v136_v11  ;;  %v1941_v43 = vsub.s32 32, %v259_v29  ;;  %v1947_v45 = vsel %vm125_vm1, %v115_v0, 2102212464  ;;  %v163_v48 = vand.u32 65535, %v1932_v27  ;;  %1105 = vmatpush.bf16.msra.mxu0 %v1475_v34  ;;  %v1654_v10 = vld [vmem:[#allocation2 + $0xac] sm:$0xf0] }
  0x9b   :  { %v142_v41 = vshrl.u32 %v1928_v26, 16  ;;  %v141_v46 = vand.u32 65535, %v1928_v26  ;;  %v1951_v50 = vshrl.u32 %v257_v19, 5  ;;  %v265_v51 = vshll.u32 %v1804_v47, %v259_v29  ;;  %v1684_v22 = vld [vmem:[#allocation2 + $0x1a4] sm:$0xf] }
  0x9c   :  { %v266_v53 = vshrl.u32 %v1802_v40, %v1941_v43  ;;  %v268_v54 = vshll.u32 %v1802_v40, %v259_v29  ;;  %v271_v55 = vshll.u32 %v1803_v42, %v259_v29  ;;  %v269_v56 = vshrl.u32 %v1803_v42, %v1941_v43  ;;  %v1588_v23 = vld [vmem:[#allocation2 + $0x1b0] sm:$0xf0]  ;;  %v1650_v34 = vld [vmem:[#allocation2 + $0x8c] sm:$0xf0] }
  0x9d   :  { %v272_v57 = vshrl.u32 %v1805_v49, %v1941_v43  ;;  %v274_v59 = vshll.u32 %v1805_v49, %v259_v29  ;;  %v275_v60 = vshrl.u32 %v1806_v52, %v1941_v43  ;;  %v1968_v40 = vmul.u32 %v142_v41, %v1935_v28 }
  0x9e   :  { %v164_v0 = vshrl.u32 %v1932_v27, 16  ;;  %v1971_v2 = vor.u32 %v266_v53, %v265_v51  ;;  %v1974_v42 = vand.u32 65535, %v1943_v44  ;;  %v263_v49 = vshrl.u32 %v1804_v47, %v1941_v43 }
  0x9f   :  { %v1978_v52 = vor.u32 %v269_v56, %v268_v54  ;;  %v273_v5 = vor.u32 %v272_v57, %v271_v55  ;;  %v276_v6 = vor.u32 %v275_v60, %v274_v59  ;;  %v106_v11 = vshrl.u32 %v1807_v58, %v1879_v36  ;;  %v1570_v55 = vld [vmem:[#allocation2 + $0x180] sm:$0xf]  ;;  %v1682_v60 = vld [vmem:[#allocation2 + $0x18c] sm:$0xf0] }
  0xa0   :  { %vm277_vm6 = vcmp.lt.s32.totalorder %v1951_v50, 1  ;;  %vm280_vm7 = vcmp.lt.s32.totalorder %v1951_v50, 4  ;;  %v1479_v12 = vor.u32 %v1656_v61, %v1476_v62  ;;  %v262_v47 = vshll.u32 %v1807_v58, %v259_v29  ;;  %v1648_v61 = vld [vmem:[#allocation2 + $0x84] sm:$0xf]  ;;  %v1444_v62 = vld [vmem:[#allocation2 + $0x90] sm:$0xf0] }
  0xa1   :  { %vm279_vm8 = vcmp.lt.s32.totalorder %v1951_v50, 3  ;;  %v289_v16 = vsel %vm277_vm6, %v1971_v2, %v1978_v52  ;;  %v290_v36 = vsel %vm280_vm7, %v276_v6, 1326507024  ;;  %v147_v19 = vshll.u32 %v1968_v40, 16  ;;  %v1680_v6 = vld [vmem:[#allocation2 + $0x184] sm:$0xf] }
  0xa2   :  { %vm278_vm9 = vcmp.lt.s32.totalorder %v1951_v50, 2  ;;  %v291_v20 = vsel %vm279_vm8, %v273_v5, %v290_v36  ;;  %1133 = vmatpush.bf16.msra.mxu2 %v1479_v12  ;;  %v1607_v21 = vor.u32 %v1688_v4, %v1604_v7  ;;  %v1997_v24 = vmul.u32 %v141_v46, %v1938_v37  ;;  %v1572_v7 = vld [vmem:[#allocation2 + $0x190] sm:$0xf0]  ;;  %v1554_v12 = vld [vmem:[#allocation2 + $0x160] sm:$0xf] }
  0xa3   :  { %v1999_v25 = vor.u32 %v263_v49, %v262_v47  ;;  %v2003_v29 = vsel %vm278_vm9, %v289_v16, %v291_v20  ;;  %v1459_v32 = vor.u32 %v1654_v10, %v1458_v8  ;;  %v2006_v35 = vmul.u32 %v141_v46, %v1935_v28  ;;  %v1644_v47 = vld [vmem:[#allocation2 + $0x64] sm:$0xf]  ;;  %v1428_v16 = vld [vmem:[#allocation2 + $0x70] sm:$0xf0] }
  0xa4   :  { %v286_v51 = vsel %vm280_vm7, %v273_v5, 920167782  ;;  %v2011_v53 = vshrl.u32 %v1943_v44, 16  ;;  %v297_v54 = vshrl.u32 %v2003_v29, 16  ;;  %1147 = vmatpush.bf16.msra.mxu3 %v1607_v21  ;;  %v1587_v56 = vor.u32 %v1686_v14, %v1586_v13  ;;  %v1412_v49 = vld [vmem:[#allocation2 + $0x50] sm:$0xf0] }
  0xa5   :  { %1106 = vmatpush.bf16.msra.mxu0 %v1459_v32  ;;  %v1463_v57 = vor.u32 %v1652_v15, %v1460_v18  ;;  %v1591_v59 = vor.u32 %v1684_v22, %v1588_v23  ;;  %v126_v46 = vsel %vm122_vm2, %v106_v11, %v1904_v3  ;;  %v128_v4 = vsel %vm124_vm3, %v1899_v63, %v1947_v45  ;;  %v1426_v3 = vld [vmem:[#allocation2 + $0x60] sm:$0xf]  ;;  %v1646_v11 = vld [vmem:[#allocation2 + $0x6c] sm:$0xf0]  ;;  %v1676_v22 = vld [vmem:[#allocation2 + $0x164] sm:$0xf] }
  0xa6   :  { %vm2024_vm10 = vc.u32 %v2006_v35, %v147_v19  ;;  %v2031_v5 = vmul.u32 %v297_v54, %v1974_v42  ;;  %v149_v8 = vshll.u32 %v1997_v24, 16  ;;  %v285_v63 = vsel %vm277_vm6, %v1999_v25, %v1971_v2  ;;  %1120 = vmatpush.bf16.msra.mxu1 %v1587_v56  ;;  %v1678_v15 = vld [vmem:[#allocation2 + $0x16c] sm:$0xf0]  ;;  %v1556_v23 = vld [vmem:[#allocation2 + $0x170] sm:$0xf0] }
  0xa7   :  { %v287_v45 = vsel %vm279_vm8, %v1978_v52, %v286_v51  ;;  %v296_v10 = vand.u32 65535, %v2003_v29  ;;  %1134 = vmatpush.bf16.msra.mxu2 %v1463_v57  ;;  %v1443_v13 = vor.u32 %v1650_v34, %v1442_v33  ;;  %v1571_v14 = vor.u32 %v1682_v60, %v1570_v55  ;;  %v1410_v55 = vld [vmem:[#allocation2 + $0x40] sm:$0xf]  ;;  %v1642_v56 = vld [vmem:[#allocation2 + $0x4c] sm:$0xf0] }
  0xa8   :  { %1148 = vmatpush.bf16.msra.mxu3 %v1591_v59  ;;  %v152_v36 = vsel %vm2024_vm10, 1, %v1800_v1  ;;  %v302_v18 = vshll.u32 %v2031_v5, 16  ;;  %v1447_v20 = vor.u32 %v1648_v61, %v1444_v62  ;;  %v1575_v21 = vor.u32 %v1680_v6, %v1572_v7  ;;  %v2057_v57 = vld [vmem:[#allocation2 + $0x140] sm:$0xf]  ;;  %v1674_v60 = vld [vmem:[#allocation2 + $0x14c] sm:$0xf0] }
  0xa9   :  { %v2048_v32 = vsel %vm123_vm5, %v126_v46, %v128_v4  ;;  %v146_v33 = vmul.u32 %v142_v41, %v1938_v37  ;;  %v2055_v34 = vsel %vm278_vm9, %v285_v63, %v287_v45  ;;  %1107 = vmatpush.bf16.msra.mxu0 %v1443_v13  ;;  %v1427_v51 = vor.u32 %v1646_v11, %v1426_v3  ;;  %v2068_v61 = vld [vmem:[#allocation2 + $0x44] sm:$0xf]  ;;  %v1540_v7 = vld [vmem:[#allocation2 + $0x150] sm:$0xf0]  ;;  %v2085_v11 = vld [vmem:[#allocation2 + $0x2c] sm:$0xf0] }
  0xaa   :  { %v2062_v39 = vmul.u32 %v163_v48, %v1935_v28  ;;  %v282_v26 = vsel %vm280_vm7, %v1978_v52, 2102212464  ;;  %v298_v41 = vmul.u32 %v296_v10, %v1974_v42  ;;  %1121 = vmatpush.bf16.msra.mxu1 %v1571_v14  ;;  %v1555_v59 = vor.u32 %v1678_v15, %v1554_v12  ;;  %v1672_v6 = vld [vmem:[#allocation2 + $0x144] sm:$0xf]  ;;  %v2102_v14 = vld [vmem:[#allocation2 + $0x120] sm:$0xf] }
  0xab   :  { %v2071_v62 = vmul.u32 %v296_v10, %v2011_v53  ;;  %1135 = vmatpush.bf16.msra.mxu2 %v1447_v20  ;;  %v1431_v46 = vor.u32 %v1644_v47, %v1428_v16  ;;  %v1559_v4 = vor.u32 %v1676_v22, %v1556_v23  ;;  %v261_v52 = vshrl.u32 %v1807_v58, %v1941_v43  ;;  %v2083_v10 = vld [vmem:[#allocation2 + $0x20] sm:$0xf]  ;;  %v2104_v15 = vld [vmem:[#allocation2 + $0x12c] sm:$0xf0]  ;;  %v2106_v47 = vld [vmem:[#allocation2 + $0x24] sm:$0xf] }
  0xac   :  { %1149 = vmatpush.bf16.msra.mxu3 %v1575_v21  ;;  %vm2077_vm11 = vc.u32 %v298_v41, %v302_v18  ;;  %v318_v63 = vand.u32 65535, %v2055_v34  ;;  %v319_v45 = vshrl.u32 %v2055_v34, 16  ;;  %v2090_v12 = vmul.u32 %v164_v0, %v1935_v28  ;;  %v2108_v28 = vld [vmem:[#allocation2 + $0x30] sm:$0xf0]  ;;  %v2125_v21 = vld [vmem:[#allocation2] sm:$0xf] }
  0xad   :  { %v2095_v58 = vmul.u32 %v163_v48, %v1938_v37  ;;  %v2100_v43 = vmul.u32 %v164_v0, %v1938_v37  ;;  %1108 = vmatpush.bf16.msra.mxu0 %v1427_v51  ;;  %v1411_v13 = vor.u32 %v1642_v56, %v1410_v55  ;;  %v153_v48 = vadd.s32 %v147_v19, %v2006_v35  ;;  %v2121_v0 = vld [vmem:[#allocation2 + $0x124] sm:$0xf]  ;;  %v2123_v20 = vld [vmem:[#allocation2 + $0x130] sm:$0xf0]  ;;  %v2127_v22 = vld [vmem:[#allocation2 + $0xc] sm:$0xf0] }
  0xae   :  { %v2113_v16 = vadd.s32 %v152_v36, %v146_v33  ;;  %v2118_v27 = vsel %vm277_vm6, %v261_v52, %v1999_v25  ;;  %1122 = vmatpush.bf16.msra.mxu1 %v1555_v59  ;;  %v1539_v37 = vor.u32 %v1674_v60, %v2057_v57  ;;  %v2129_v23 = vld [vmem:[#allocation2 + $0x100] sm:$0xf]  ;;  %v304_v19 = vshll.u32 %v2071_v62, 16  ;;  %v2136_v33 = vld [vmem:[#allocation2 + $0x10c] sm:$0xf0] }
  0xaf   :  { %v307_v25 = vsel %vm2077_vm11, 1, %v1800_v1  ;;  %1136 = vmatpush.bf16.msra.mxu2 %v1431_v46  ;;  %v1415_v35 = vor.u32 %v2068_v61, %v1412_v49  ;;  %v1543_v36 = vor.u32 %v1672_v6, %v1540_v7  ;;  %v2138_v34 = vld [vmem:[#allocation2 + $0x4] sm:$0xf]  ;;  %v2143_v51 = vsel %vm279_vm8, %v1971_v2, %v282_v26  ;;  %v2153_v59 = vld [vmem:[#allocation2 + $0x10] sm:$0xf0] }
  0xb0   :  { %1150 = vmatpush.bf16.msra.mxu3 %v1559_v4  ;;  %v301_v55 = vmul.u32 %v297_v54, %v2011_v53  ;;  %v308_v56 = vadd.s32 %v302_v18, %v298_v41  ;;  %v2151_v57 = vmul.u32 %v318_v63, %v1974_v42  ;;  %v2155_v60 = vld [vmem:[#allocation2 + $0x104] sm:$0xf]  ;;  %v2157_v61 = vld [vmem:[#allocation2 + $0x110] sm:$0xf0]  ;;  %v2160_v46 = vmul.u32 %v319_v45, %v1974_v42  ;;  %v1498_v18 = vld [vmem:[#allocation2 + $0xe8] sm:$0xf] }
  0xb1   :  { %v2163_v2 = vmul.u32 %v318_v63, %v2011_v53  ;;  %v2166_v29 = vmul.u32 %v319_v45, %v2011_v53  ;;  %1109 = vmatpush.bf16.msra.mxu0 %v1411_v13  ;;  %v1395_v54 = vor.u32 %v2085_v11, %v2083_v10  ;;  %v1663_v26 = vld [vmem:[#allocation2 + $0xf4] sm:$0xf0]  ;;  %v2170_v41 = vld [vmem:[#allocation2 + $0x1e8] sm:$0xf]  ;;  %v1523_v42 = vor.u32 %v2104_v15, %v2102_v14  ;;  %v1661_v7 = vld [vmem:[#allocation2 + $0xec] sm:$0xf] }
  0xb2   :  { %v309_v4 = vadd.s32 %v307_v25, %v301_v55  ;;  %1123 = vmatpush.bf16.msra.mxu1 %v1539_v37  ;;  %v1399_v49 = vor.u32 %v2106_v47, %v2108_v28  ;;  %v1695_v6 = vld [vmem:[#allocation2 + $0x1f4] sm:$0xf0]  ;;  %v1500_v53 = vld [vmem:[#allocation2 + $0xf8] sm:$0xf0]  ;;  %vm2178_vm12 = vc.u32 %v153_v48, %v149_v8  ;;  %v1527_v3 = vor.u32 %v2121_v0, %v2123_v20  ;;  %v1693_v10 = vld [vmem:[#allocation2 + $0x1ec] sm:$0xf] }
  0xb3   :  { %1137 = vmatpush.bf16.msra.mxu2 %v1415_v35  ;;  %v1379_v63 = vor.u32 %v2127_v22, %v2125_v21  ;;  %v1507_v45 = vor.u32 %v2136_v33, %v2129_v23  ;;  %v1628_v11 = vld [vmem:[#allocation2 + $0x1f8] sm:$0xf0]  ;;  %v1383_v13 = vor.u32 %v2138_v34, %v2153_v59  ;;  %v1511_v8 = vor.u32 %v2155_v60, %v2157_v61  ;;  %v2192_v15 = vld [vmem:[#allocation2 + $0xc8] sm:$0xf]  ;;  %v1659_v47 = vld [vmem:[#allocation2 + $0xd4] sm:$0xf0] }
  0xb4   :  { %1151 = vmatpush.bf16.msra.mxu3 %v1543_v36  ;;  %v1499_v14 = vor.u32 %v1663_v26, %v1498_v18  ;;  %vm2194_vm13 = vc.u32 %v308_v56, %v304_v19  ;;  %v1627_v48 = vor.u32 %v1695_v6, %v2170_v41  ;;  %v1503_v37 = vor.u32 %v1661_v7, %v1500_v53  ;;  %v2199_v0 = vld [vmem:[#allocation2 + $0x1c8] sm:$0xf]  ;;  %v2201_v20 = vld [vmem:[#allocation2 + $0x1d4] sm:$0xf0]  ;;  %v2207_v19 = vld [vmem:[#allocation2 + $0xcc] sm:$0xf] }
  0xb5   :  { %1110 = vmatpush.bf16.msra.mxu0 %v1395_v54  ;;  %v156_v21 = vsel %vm2178_vm12, 1, %v1800_v1  ;;  %v169_v22 = vshll.u32 %v2090_v12, 16  ;;  %v1631_v23 = vor.u32 %v1693_v10, %v1628_v11  ;;  %v2209_v25 = vld [vmem:[#allocation2 + $0xd8] sm:$0xf0]  ;;  %v148_v35 = vshrl.u32 %v1968_v40, 16 }
  0xb6   :  { %1124 = vmatpush.bf16.msra.mxu1 %v1523_v42  ;;  %v158_v36 = vadd.s32 %v156_v21, %v2113_v16  ;;  %v171_v33 = vshll.u32 %v2095_v58, 16  ;;  %v311_v55 = vsel %vm2194_vm13, 1, %v1800_v1  ;;  %v324_v56 = vshll.u32 %v2160_v46, 16  ;;  %v1612_v18 = vld [vmem:[#allocation2 + $0x1d8] sm:$0xf0] }
  0xb7   :  { %1138 = vmatpush.bf16.msra.mxu2 %v1399_v49  ;;  %vm173_vm14 = vc.u32 %v2062_v39, %v169_v22  ;;  %v175_v34 = vadd.s32 %v169_v22, %v2062_v39  ;;  %v1483_v59 = vor.u32 %v1659_v47, %v2192_v15  ;;  %v313_v16 = vadd.s32 %v311_v55, %v309_v4  ;;  %v1689_v39 = vld [vmem:[#allocation2 + $0x1cc] sm:$0xf]  ;;  %v1466_v6 = vld [vmem:[#allocation2 + $0xa8] sm:$0xf]  ;;  %v1655_v7 = vld [vmem:[#allocation2 + $0xb4] sm:$0xf0] }
  0xb8   :  { %1152 = vmatpush.bf16.msra.mxu3 %v1527_v3  ;;  %v159_v60 = vadd.s32 %v158_v36, %v148_v35  ;;  %v174_v40 = vsel %vm173_vm14, 1, %v1800_v1  ;;  %v1611_v61 = vor.u32 %v2201_v20, %v2199_v0  ;;  %v1487_v54 = vor.u32 %v2207_v19, %v2209_v25  ;;  %v1594_v3 = vld [vmem:[#allocation2 + $0x1a8] sm:$0xf]  ;;  %v1653_v10 = vld [vmem:[#allocation2 + $0xac] sm:$0xf] }
  0xb9   :  { %1111 = vmatpush.bf16.msra.mxu0 %v1379_v63  ;;  %v176_v26 = vadd.s32 %v174_v40, %v2100_v43  ;;  %vm177_vm15 = vc.u32 %v175_v34, %v171_v33  ;;  %v150_v41 = vshrl.u32 %v1997_v24, 16  ;;  %v170_v42 = vshrl.u32 %v2090_v12, 16  ;;  %v1687_v12 = vld [vmem:[#allocation2 + $0x1b4] sm:$0xf0]  ;;  %v1468_v11 = vld [vmem:[#allocation2 + $0xb8] sm:$0xf0] }
  0xba   :  { %1125 = vmatpush.bf16.msra.mxu1 %v1507_v45  ;;  %v178_v4 = vsel %vm177_vm15, 1, %v1800_v1  ;;  %v303_v49 = vshrl.u32 %v2031_v5, 16  ;;  %v326_v52 = vshll.u32 %v2163_v2, 16  ;;  %vm328_vm0 = vc.u32 %v2151_v57, %v324_v56  ;;  %v1685_v15 = vld [vmem:[#allocation2 + $0x1ac] sm:$0xf] }
  0xbb   :  { %1139 = vmatpush.bf16.msra.mxu2 %v1383_v13  ;;  %v180_v53 = vadd.s32 %v178_v4, %v176_v26  ;;  %v330_v43 = vadd.s32 %v324_v56, %v2151_v57  ;;  %v1615_v24 = vor.u32 %v1689_v39, %v1612_v18  ;;  %v2234_v63 = vadd.s32 %v159_v60, %v150_v41  ;;  %v1596_v47 = vld [vmem:[#allocation2 + $0x1b8] sm:$0xf0]  ;;  %v1450_v20 = vld [vmem:[#allocation2 + $0x88] sm:$0xf]  ;;  %v1651_v21 = vld [vmem:[#allocation2 + $0x94] sm:$0xf0] }
  0xbc   :  { %1153 = vmatpush.bf16.msra.mxu3 %v1511_v8  ;;  %v314_v45 = vadd.s32 %v313_v16, %v303_v49  ;;  %v329_v5 = vsel %vm328_vm0, 1, %v1800_v1  ;;  %v172_v13 = vshrl.u32 %v2095_v58, 16  ;;  %v1467_v57 = vor.u32 %v1655_v7, %v1466_v6  ;;  %v1578_v19 = vld [vmem:[#allocation2 + $0x188] sm:$0xf]  ;;  %v1683_v25 = vld [vmem:[#allocation2 + $0x194] sm:$0xf0] }
  0xbd   :  { %1160 = vmatpush.bf16.msrb.mxu0 %v1499_v14  ;;  %v181_v8 = vadd.s32 %v180_v53, %v170_v42  ;;  %v331_v14 = vadd.s32 %v329_v5, %v2166_v29  ;;  %vm332_vm1 = vc.u32 %v330_v43, %v326_v52  ;;  %v2239_v28 = vadd.s32 %v175_v34, %v171_v33  ;;  %v1452_v36 = vld [vmem:[#allocation2 + $0x98] sm:$0xf0] }
  0xbe   :  { %1174 = vmatpush.bf16.msrb.mxu1 %v1627_v48  ;;  %v305_v48 = vshrl.u32 %v2071_v62, 16  ;;  %v1595_v0 = vor.u32 %v1687_v12, %v1594_v3  ;;  %v325_v58 = vshrl.u32 %v2160_v46, 16  ;;  %v1471_v29 = vor.u32 %v1653_v10, %v1468_v11  ;;  %v1580_v60 = vld [vmem:[#allocation2 + $0x198] sm:$0xf0] }
  0xbf   :  { %1188 = vmatpush.bf16.msrb.mxu2 %v1503_v37  ;;  %v333_v37 = vsel %vm332_vm1, 1, %v1800_v1  ;;  %v182_v22 = vadd.s32 %v181_v8, %v172_v13  ;;  %vm185_vm2 = vc.u32 %v2234_v63, %v2239_v28  ;;  %v1599_v62 = vor.u32 %v1685_v15, %v1596_v47  ;;  %v1649_v1 = vld [vmem:[#allocation2 + $0x8c] sm:$0xf] }
  0xc0   :  { %1202 = vmatpush.bf16.msrb.mxu3 %v1631_v23  ;;  %v335_v23 = vadd.s32 %v333_v37, %v331_v14  ;;  %v2246_v35 = vadd.s32 %v314_v45, %v305_v48  ;;  %v327_v34 = vshrl.u32 %v2163_v2, 16  ;;  %v183_v46 = vmul.u32 %v1912_v9, %v2048_v32 }
  0xc1   :  { %1161 = vmatpush.bf16.msrb.mxu0 %v1483_v59  ;;  %v186_v33 = vadd.s32 1, %v182_v22  ;;  %v1451_v56 = vor.u32 %v1651_v21, %v1450_v20  ;;  %v1681_v59 = vld [vmem:[#allocation2 + $0x18c] sm:$0xf]  ;;  %v334_v40 = vadd.s32 %v330_v43, %v326_v52  ;;  %v284_v16 = vsel %vm278_vm9, %v2118_v27, %v2143_v51 }
  0xc2   :  { %1175 = vmatpush.bf16.msrb.mxu1 %v1611_v61  ;;  %v336_v55 = vadd.s32 %v335_v23, %v325_v58  ;;  %v1579_v61 = vor.u32 %v1683_v25, %v1578_v19  ;;  %v1455_v39 = vor.u32 %v1649_v1, %v1452_v36  ;;  %v1583_v32 = vor.u32 %v1681_v59, %v1580_v60  ;;  %v1669_v19 = vld [vmem:[#allocation2 + $0x12c] sm:$0xf] }
  0xc3   :  { %1189 = vmatpush.bf16.msrb.mxu2 %v1487_v54  ;;  %v187_v54 = vsel %vm185_vm2, %v186_v33, %v182_v22  ;;  %vm340_vm3 = vc.u32 %v2246_v35, %v334_v40  ;;  %v338_v26 = vmul.u32 %v1943_v44, %v284_v16  ;;  %v184_v10 = vadd.s32 %v2239_v28, %v2234_v63  ;;  %v1647_v16 = vld [vmem:[#allocation2 + $0x74] sm:$0xf0] }
  0xc4   :  { %1203 = vmatpush.bf16.msrb.mxu3 %v1615_v24  ;;  %v337_v2 = vadd.s32 %v336_v55, %v327_v34  ;;  %v188_v9 = vadd.s32 %v187_v54, %v183_v46  ;;  %vm92_vm8 = vcmp.lt.s32.totalorder %v1870_v17, 0  ;;  %v339_v20 = vadd.s32 %v334_v40, %v2246_v35  ;;  %v1434_v40 = vld [vmem:[#allocation2 + $0x68] sm:$0xf] }
  0xc5   :  { %1162 = vmatpush.bf16.msrb.mxu0 %v1467_v57  ;;  %vm2268_vm9 = vcmp.le.f32.partialorder %v90_v31, 0.7853982  ;;  %vm247_vm10 = vcmp.lt.s32.totalorder %v1873_v30, 0  ;;  %vm2282_vm11 = vcmp.le.f32.partialorder %v245_v38, 0.7853982 }
  0xc6   :  { %1176 = vmatpush.bf16.msrb.mxu1 %v1595_v0  ;;  %v341_v18 = vadd.s32 1, %v337_v2  ;;  %v189_v50 = vadd.s32 536870912, %v188_v9  ;;  %v1635_v31 = vld [vmem:[#allocation2 + $0x14] sm:$0xf0] }
  0xc7   :  { %1190 = vmatpush.bf16.msrb.mxu2 %v1471_v29 }
  0xc8   :  { %1204 = vmatpush.bf16.msrb.mxu3 %v1599_v62  ;;  %v342_v27 = vsel %vm340_vm3, %v341_v18, %v337_v2  ;;  %v190_v51 = vshrl.u32 %v189_v50, 30  ;;  %v1435_v2 = vor.u32 %v1647_v16, %v1434_v40  ;;  %v1436_v50 = vld [vmem:[#allocation2 + $0x78] sm:$0xf0]  ;;  %v1514_v16 = vld [vmem:[#allocation2 + $0x108] sm:$0xf] }
  0xc9   :  { %1163 = vmatpush.bf16.msrb.mxu0 %v1451_v56  ;;  %v343_v41 = vadd.s32 %v342_v27, %v338_v26  ;;  %v1677_v27 = vld [vmem:[#allocation2 + $0x16c] sm:$0xf] }
  0xca   :  { %1177 = vmatpush.bf16.msrb.mxu1 %v1579_v61  ;;  %v191_v42 = vshll.u32 %v190_v51, 30  ;;  %v214_v47 = vsub.s32 4, %v190_v51 }
  0xcb   :  { %1191 = vmatpush.bf16.msrb.mxu2 %v1455_v39  ;;  %v344_v4 = vadd.s32 536870912, %v343_v41  ;;  %v1562_v39 = vld [vmem:[#allocation2 + $0x168] sm:$0xf] }
  0xcc   :  { %1205 = vmatpush.bf16.msrb.mxu3 %v1583_v32  ;;  %v192_v49 = vsub.s32 %v188_v9, %v191_v42  ;;  %v215_v63 = vsel %vm92_vm8, %v214_v47, %v190_v51  ;;  %v1679_v9 = vld [vmem:[#allocation2 + $0x174] sm:$0xf0]  ;;  %v1645_v32 = vld [vmem:[#allocation2 + $0x6c] sm:$0xf]  ;;  %v1564_v51 = vld [vmem:[#allocation2 + $0x178] sm:$0xf0] }
  0xcd   :  { %v345_v6 = vshrl.u32 %v344_v4, 30  ;;  %v2274_v35 = vsel %vm2268_vm9, 0, %v215_v63  ;;  %v1563_v26 = vor.u32 %v1679_v9, %v1562_v39  ;;  %1164 = vmatpush.bf16.msrb.mxu0 %v1435_v2  ;;  %v1439_v42 = vor.u32 %v1645_v32, %v1436_v50  ;;  %v1667_v2 = vld [vmem:[#allocation2 + $0x114] sm:$0xf0]  ;;  %v1633_v39 = vld [vmem:[#allocation2 + $0xc] sm:$0xf] }
  0xce   :  { %vm193_vm4 = vcmp.lt.s32.totalorder %v192_v49, 0  ;;  %v194_v7 = vsub.s32 0, %v192_v49  ;;  %v2278_v56 = vadd.s32 3, %v2274_v35  ;;  %v1567_v4 = vor.u32 %v1677_v27, %v1564_v51  ;;  %v1388_v9 = vld [vmem:[#allocation2 + $0x18] sm:$0xf0] }
  0xcf   :  { %v346_v53 = vshll.u32 %v345_v6, 30  ;;  %v369_v34 = vsub.s32 4, %v345_v6  ;;  %1178 = vmatpush.bf16.msrb.mxu1 %v1563_v26  ;;  %1192 = vmatpush.bf16.msrb.mxu2 %v1439_v42  ;;  %v1515_v26 = vor.u32 %v1667_v2, %v1514_v16  ;;  %v1391_v50 = vor.u32 %v1633_v39, %v1388_v9  ;;  %v1665_v27 = vld [vmem:[#allocation2 + $0x10c] sm:$0xf]  ;;  %v1516_v51 = vld [vmem:[#allocation2 + $0x118] sm:$0xf0] }
  0xd0   :  { %v195_v52 = vsel %vm193_vm4, %v194_v7, %v192_v49  ;;  %v1546_v7 = vld [vmem:[#allocation2 + $0x148] sm:$0xf]  ;;  %1206 = vmatpush.bf16.msrb.mxu3 %v1567_v4 }
  0xd1   :  { %v347_v43 = vsub.s32 %v343_v41, %v346_v53  ;;  %v196_v24 = vclz %v195_v52  ;;  %v370_v54 = vsel %vm247_vm10, %v369_v34, %v345_v6  ;;  %v1643_v6 = vld [vmem:[#allocation2 + $0x54] sm:$0xf0]  ;;  %v1386_v34 = vld [vmem:[#allocation2 + $0x8] sm:$0xf] }
  0xd2   :  { %v2299_v52 = vsel %vm2282_vm11, 0, %v370_v54  ;;  %v1387_v40 = vor.u32 %v1635_v31, %v1386_v34 }
  0xd3   :  { %vm348_vm5 = vcmp.lt.s32.totalorder %v347_v43, 0  ;;  %v1365_v44 = vadd.s32 4294967294, %v196_v24  ;;  %v349_v3 = vsub.s32 0, %v347_v43  ;;  %v1675_v24 = vld [vmem:[#allocation2 + $0x154] sm:$0xf0]  ;;  %v389_v4 = vadd.s32 3, %v2299_v52 }
  0xd5   :  { %vm1366_vm6 = vcmp.lt.s32.totalorder %v1365_v44, 0  ;;  %v350_v12 = vsel %vm348_vm5, %v349_v3, %v347_v43 }
  0xd6   :  { %v199_v45 = vsel %vm1366_vm6, 0, %v1365_v44  ;;  %v351_v5 = vclz %v350_v12  ;;  %v1641_v44 = vld [vmem:[#allocation2 + $0x4c] sm:$0xf] }
  0xd7   :  { %v200_v11 = vsub.s32 32, %v199_v45  ;;  %v204_v13 = vsub.s32 4294967266, %v199_v45  ;;  %v201_v14 = vshll.u32 %v192_v49, %v199_v45  ;;  %v1418_v49 = vld [vmem:[#allocation2 + $0x48] sm:$0xf]  ;;  %v1547_v45 = vor.u32 %v1675_v24, %v1546_v7 }
  0xd8   :  { %v1368_v8 = vadd.s32 4294967294, %v351_v5  ;;  %v1420_v5 = vld [vmem:[#allocation2 + $0x58] sm:$0xf0]  ;;  %v235_v24 = vand.u32 3, %v2278_v56 }
  0xd9   :  { %v202_v57 = vshrl.u32 %v184_v10, %v200_v11  ;;  %v205_v15 = vadd.s32 127, %v204_v13  ;;  %v1423_v11 = vor.u32 %v1641_v44, %v1420_v5  ;;  %v1673_v13 = vld [vmem:[#allocation2 + $0x14c] sm:$0xf]  ;;  %1179 = vmatpush.bf16.msrb.mxu1 %v1547_v45  ;;  %v390_v45 = vand.u32 3, %v389_v4 }
  0xda   :  { %vm1369_vm7 = vcmp.lt.s32.totalorder %v1368_v8, 0  ;;  %v698_v5 = vand.u32 3, %v2299_v52  ;;  %vm236_vm13 = vcmp.lt.s32.totalorder %v235_v24, 2  ;;  %vm237_vm14 = vcmp.eq.s32.totalorder %v235_v24, 0 }
  0xdb   :  { %v203_v48 = vor.u32 %v202_v57, %v201_v14  ;;  %v206_v37 = vshll.u32 %v205_v15, 23  ;;  %v354_v0 = vsel %vm1369_vm7, 0, %v1368_v8  ;;  %v1548_v8 = vld [vmem:[#allocation2 + $0x158] sm:$0xf0]  ;;  %v1402_v14 = vld [vmem:[#allocation2 + $0x28] sm:$0xf]  ;;  %1193 = vmatpush.bf16.msrb.mxu2 %v1423_v11 }
  0xdc   :  { %v355_v21 = vsub.s32 32, %v354_v0  ;;  %v359_v22 = vsub.s32 4294967266, %v354_v0  ;;  %v356_v28 = vshll.u32 %v347_v43, %v354_v0  ;;  %v1419_v43 = vor.u32 %v1643_v6, %v1418_v49 }
  0xdd   :  { %v207_v58 = vor.u32 4788187, %v206_v37  ;;  %v210_v62 = vcvt.s32.f32 %v203_v48  ;;  %v1551_v48 = vor.u32 %v1673_v13, %v1548_v8  ;;  %v1639_v37 = vld [vmem:[#allocation2 + $0x34] sm:$0xf0]  ;;  %v1519_v49 = vor.u32 %v1665_v27, %v1516_v51 }
  0xde   :  { %v357_v23 = vshrl.u32 %v339_v20, %v355_v21  ;;  %v360_v29 = vadd.s32 127, %v359_v22  ;;  %1165 = vmatpush.bf16.msrb.mxu0 %v1419_v43  ;;  %v1403_v20 = vor.u32 %v1639_v37, %v1402_v14  ;;  %v1530_v21 = vld [vmem:[#allocation2 + $0x128] sm:$0xf]  ;;  %v1671_v22 = vld [vmem:[#allocation2 + $0x134] sm:$0xf0]  ;;  %vm240_vm15 = vcmp.eq.s32.totalorder %v235_v24, 2 }
  0xdf   :  { %v208_v25 = vand.u32 2147483647, %v207_v58  ;;  %v1637_v58 = vld [vmem:[#allocation2 + $0x2c] sm:$0xf]  ;;  %1207 = vmatpush.bf16.msrb.mxu3 %v1551_v48  ;;  %vm391_vm1 = vcmp.lt.s32.totalorder %v390_v45, 2  ;;  %vm699_vm3 = vcmp.lt.s32.totalorder %v698_v5, 2 }
  0xe0   :  { %v358_v1 = vor.u32 %v357_v23, %v356_v28  ;;  %v361_v36 = vshll.u32 %v360_v29, 23  ;;  %v1531_v23 = vor.u32 %v1671_v22, %v1530_v21  ;;  %v1404_v29 = vld [vmem:[#allocation2 + $0x38] sm:$0xf0]  ;;  %vm700_vm4 = vcmp.eq.s32.totalorder %v698_v5, 0 }
  0xe1   :  { %v211_v33 = vmul.f32 %v210_v62, %v208_v25  ;;  %v1532_v25 = vld [vmem:[#allocation2 + $0x138] sm:$0xf0]  ;;  %vm392_vm5 = vcmp.eq.s32.totalorder %v390_v45, 0  ;;  %vm395_vm6 = vcmp.eq.s32.totalorder %v390_v45, 2  ;;  %vm703_vm7 = vcmp.eq.s32.totalorder %v698_v5, 2 }
  0xe2   :  { %v362_v55 = vor.u32 4788187, %v361_v36  ;;  %v365_v60 = vcvt.s32.f32 %v358_v1  ;;  %v1407_v36 = vor.u32 %v1637_v58, %v1404_v29  ;;  %1166 = vmatpush.bf16.msrb.mxu0 %v1403_v20  ;;  %1180 = vmatpush.bf16.msrb.mxu1 %v1531_v23 }
  0xe3   :  { %v212_v46 = vxor.u32 2147483648, %v211_v33 }
  0xe4   :  { %v363_v59 = vand.u32 2147483647, %v362_v55  ;;  %1194 = vmatpush.bf16.msrb.mxu2 %v1407_v36 }
  0xe5   :  { %v213_v61 = vsel %vm92_vm8, %v212_v46, %v211_v33  ;;  %v1535_v33 = vor.u32 %v1669_v19, %v1532_v25  ;;  %vm233_vm8 = vweird.f32 %v1870_v17 }
  0xe6   :  { %v2293_v38 = vsel %vm2268_vm9, %v1870_v17, %v213_v61  ;;  %v366_v18 = vmul.f32 %v365_v60, %v363_v59  ;;  %1167 = vmatpush.bf16.msrb.mxu0 %v1387_v40  ;;  %1181 = vmatpush.bf16.msrb.mxu1 %v1515_v26  ;;  %vm388_vm9 = vweird.f32 %v1873_v30  ;;  %v774_v17 = vld [vmem:[%s2342_s4] sm:$0xf]  ;;  %s1808_s4 = smov [#allocation5]  }
  0xe7   :  { %v218_v41 = vmul.f32 %v2293_v38, %v2293_v38  ;;  %1208 = vmatpush.bf16.msrb.mxu3 %v1535_v33  ;;  %v778_v26 = vperm.slane %v774_v17, 2  ;;  %s1333_s14 = sshll.u32 %s1808_s4, 4  ;;  %s1334_s14 = int_to_ptr.vmem [resolvable:$true] %s1333_s14 }
  0xe8   :  { %v367_v53 = vxor.u32 2147483648, %v366_v18  ;;  %1195 = vmatpush.bf16.msrb.mxu2 %v1391_v50 }
  0xe9   :  { %v219_v3 = vmul.f32 -0.001358992, %v218_v41  ;;  %v226_v12 = vmul.f32 -0.00019511016, %v218_v41 }
  0xea   :  { %v368_v10 = vsel %vm247_vm10, %v367_v53, %v366_v18  ;;  %vm1309_vm10 = vcmask 1040384  }
  0xeb   :  { %v220_v57 = vadd.f32 0.041655596, %v219_v3  ;;  %v227_v15 = vadd.f32 0.008332121, %v226_v12  ;;  %v2306_v47 = vsel %vm2282_vm11, %v1873_v30, %v368_v10  ;;  %1209 = vmatpush.bf16.msrb.mxu3 %v1519_v49  ;;  %vm1321_vm11 = vcmask 1041408  }
  0xec   :  { %v373_v0 = vmul.f32 %v2306_v47, %v2306_v47 }
  0xed   :  { %v221_v63 = vmul.f32 %v220_v57, %v218_v41  ;;  %v228_v28 = vmul.f32 %v227_v15, %v218_v41 }
  0xee   :  { %v374_v62 = vmul.f32 -0.001358992, %v373_v0  ;;  %v381_v1 = vmul.f32 -0.00019511016, %v373_v0 }
  0xef   :  { %v222_v55 = vadd.f32 -0.4999988, %v221_v63  ;;  %v229_v46 = vadd.f32 -0.16666654, %v228_v28 }
  0xf0   :  { %v375_v59 = vadd.f32 0.041655596, %v374_v62  ;;  %v382_v60 = vadd.f32 0.008332121, %v381_v1  ;;  %v776_v62 = vperm.slane %v774_v17, 0  ;;  %v777_v1 = vperm.slane %v774_v17, 1 }
  0xf1   :  { %v223_v61 = vmul.f32 %v222_v55, %v218_v41  ;;  %v230_v54 = vmul.f32 %v229_v46, %v218_v41  ;;  %v544_v41 = vand.u32 3, %v2274_v35 }
  0xf2   :  { %v376_v32 = vmul.f32 %v375_v59, %v373_v0  ;;  %v383_v18 = vmul.f32 %v382_v60, %v373_v0 }
  0xf3   :  { %v231_v42 = vadd.f32 1.0, %v230_v54  ;;  %v224_v6 = vadd.f32 1.0, %v223_v61  ;;  %vm545_vm12 = vcmp.lt.s32.totalorder %v544_v41, 2  ;;  %vm546_vm0 = vcmp.eq.s32.totalorder %v544_v41, 0 }
  0xf4   :  { %v377_v7 = vadd.f32 -0.4999988, %v376_v32  ;;  %v384_v53 = vadd.f32 -0.16666654, %v383_v18  ;;  %vm549_vm2 = vcmp.eq.s32.totalorder %v544_v41, 2 }
  0xf5   :  { %v232_v43 = vmul.f32 %v231_v42, %v2293_v38  ;;  %v241_v10 = vxor.u32 2147483648, %v224_v6  ;;  %v779_v42 = vperm.slane %v774_v17, 3 }
  0xf6   :  { %v378_v44 = vmul.f32 %v377_v7, %v373_v0  ;;  %v385_v3 = vmul.f32 %v384_v53, %v373_v0 }
  0xf7   :  { %v238_v12 = vxor.u32 2147483648, %v232_v43  ;;  %v242_v14 = vsel %vm240_vm15, %v241_v10, %v232_v43  ;;  %v551_v57 = vsel %vm549_vm2, %v241_v10, %v232_v43 }
  0xf8   :  { %v379_v11 = vadd.f32 1.0, %v378_v44  ;;  %v386_v13 = vadd.f32 1.0, %v385_v3 }
  0xf9   :  { %v239_v35 = vsel %vm237_vm14, %v224_v6, %v238_v12  ;;  %v548_v8 = vsel %vm546_vm0, %v224_v6, %v238_v12 }
  0xfa   :  { %v387_v38 = vmul.f32 %v386_v13, %v2306_v47  ;;  %v396_v56 = vxor.u32 2147483648, %v379_v11  ;;  %v243_v15 = vsel %vm236_vm13, %v239_v35, %v242_v14  ;;  %v552_v48 = vsel %vm545_vm12, %v548_v8, %v551_v57 }
  0xfb   :  { %v244_v58 = vsel %vm233_vm8, nan, %v243_v15  ;;  %v553_v28 = vsel %vm233_vm8, nan, %v552_v48  ;;  %vm1323_vm12 = vcmask 1045508   ;;  %vm1325_vm13 = vcmask 1043456  }
  0xfc   :  { %v393_v52 = vxor.u32 2147483648, %v387_v38  ;;  %v397_v0 = vsel %vm395_vm6, %v396_v56, %v387_v38  ;;  %v705_v47 = vsel %vm703_vm7, %v396_v56, %v387_v38 }
  0xfe   :  { %v394_v37 = vsel %vm392_vm5, %v379_v11, %v393_v52  ;;  %v702_v20 = vsel %vm700_vm4, %v379_v11, %v393_v52 }
  0xff   :  { %v398_v21 = vsel %vm391_vm1, %v394_v37, %v397_v0  ;;  %v706_v22 = vsel %vm699_vm3, %v702_v20, %v705_v47 }
 0x100   :  { %v399_v63 = vsel %vm388_vm9, nan, %v398_v21  ;;  %v707_v23 = vsel %vm388_vm9, nan, %v706_v22 }
 0x101   :  { %v708_v29 = vpack.c.bf16 %v399_v63, %v244_v58  ;;  %v709_v19 = vpack.c.bf16 %v707_v23, %v553_v28 }
 0x103   :  { %1112 = vmatmul.bf16.vlgmr.msra.gmra.mxu0 %v708_v29  ;;  %1126 = vmatmul.bf16.vlgmr.msra.gmra.mxu1 %v709_v19 }
 0x104   :  { %1140 = vmatmul.bf16.vlgmr.msra.gmra.mxu2 %v708_v29  ;;  %1154 = vmatmul.bf16.vlgmr.msra.gmra.mxu3 %v709_v19 }
 0x113   :  { %1168 = vmatmul.bf16.vlgmr.msrb.gmra.mxu0 %v708_v29  ;;  %1182 = vmatmul.bf16.vlgmr.msrb.gmra.mxu1 %v709_v19 }
 0x114   :  { %1196 = vmatmul.bf16.vlgmr.msrb.gmra.mxu2 %v708_v29  ;;  %1210 = vmatmul.bf16.vlgmr.msrb.gmra.mxu3 %v709_v19 }
 0x180   :  { %v1113_v30 = vpop.f32.mrf.mxu0  ;;  %v1127_v25 = vpop.f32.mrf.mxu1 }
 0x181   :  { %v1114_v36 = vadd.f32 %v1113_v30, %v776_v62 }
 0x183   :  { %v1128_v59 = vadd.f32 %v1127_v25, %v1114_v36 }
 0x185   :  { %v1273_v12 = vmul.f32 %v1128_v59, %v1128_v59 }
 0x187   :  { %v1141_v33 = vpop.f32.mrf.mxu2  ;;  %v1155_v34 = vpop.f32.mrf.mxu3 }
 0x188   :  { %v1142_v55 = vadd.f32 %v1141_v33, %v777_v1  ;;  %v1115_v46 = vpop.f32.mrf.mxu0  ;;  %v1129_v31 = vpop.f32.mrf.mxu1 }
 0x189   :  { %v1116_v40 = vadd.f32 %v1115_v46, %v776_v62 }
 0x18a   :  { %v1156_v60 = vadd.f32 %v1155_v34, %v1142_v55 }
 0x18b   :  { %v1130_v61 = vadd.f32 %v1129_v31, %v1116_v40 }
 0x18c   :  { %v1216_v16 = vpack.c.bf16 %v1156_v60, %v1128_v59  ;;  %v1274_v4 = vmul.f32 %v1156_v60, %v1156_v60 }
 0x18d   :  { %v1241_v50 = vmul.f32 0.0, %v1130_v61 }
 0x18e   :  { %1220 = vst [vmem:[#allocation5] sm:$0xff] %v1216_v16 }
 0x18f   :  { %v1143_v54 = vpop.f32.mrf.mxu2  ;;  %v1157_v2 = vpop.f32.mrf.mxu3  ;;  %v1277_v7 = vmul.f32 %v1241_v50, %v1241_v50  ;;  %v1245_v14 = vadd.f32 %v1241_v50, %v1128_v59 }
 0x190   :  { %v1144_v39 = vadd.f32 %v1143_v54, %v777_v1  ;;  %v1169_v9 = vpop.f32.mrf.mxu0  ;;  %v1183_v32 = vpop.f32.mrf.mxu1 }
 0x191   :  { %v1170_v6 = vadd.f32 %v1169_v9, %v778_v26  ;;  %v1281_v35 = vadd.f32 %v1277_v7, %v1273_v12  ;;  %v1246_v22 = vrot.slane %v1245_v14, 4 }
 0x192   :  { %v1158_v18 = vadd.f32 %v1157_v2, %v1144_v39 }
 0x193   :  { %v1184_v10 = vadd.f32 %v1183_v32, %v1170_v6  ;;  %v1282_v15 = vrot.slane %v1281_v35, 4  ;;  %v1247_v36 = vadd.f32 %v1246_v22, %v1245_v14 }
 0x194   :  { %v1218_v27 = vpack.c.bf16 %v1158_v18, %v1130_v61  ;;  %v1242_v51 = vmul.f32 0.0, %v1158_v18 }
 0x195   :  { %v1275_v48 = vmul.f32 %v1184_v10, %v1184_v10  ;;  %v1283_v19 = vadd.f32 %v1282_v15, %v1281_v35  ;;  %v1248_v2 = vrot.slane %v1247_v36, 2 }
 0x196   :  { %1222 = vst [vmem:[#allocation5 + $0x10] sm:$0xff] %v1218_v27  ;;  %v1278_v49 = vmul.f32 %v1242_v51, %v1242_v51  ;;  %v1252_v43 = vadd.f32 %v1242_v51, %v1156_v60 }
 0x197   :  { %v1197_v53 = vpop.f32.mrf.mxu2  ;;  %v1211_v41 = vpop.f32.mrf.mxu3  ;;  %v1284_v60 = vrot.slane %v1283_v19, 2 }
 0x198   :  { %v1288_v24 = vadd.f32 %v1278_v49, %v1274_v4  ;;  %v1198_v44 = vadd.f32 %v1197_v53, %v779_v42  ;;  %v1171_v3 = vpop.f32.mrf.mxu0  ;;  %v1185_v13 = vpop.f32.mrf.mxu1  ;;  %v1253_v56 = vrot.slane %v1252_v43, 4  ;;  %v1249_v49 = vadd.f32 %v1248_v2, %v1247_v36 }
 0x199   :  { %v1172_v45 = vadd.f32 %v1171_v3, %v778_v26  ;;  %v1285_v50 = vadd.f32 %v1284_v60, %v1283_v19 }
 0x19a   :  { %v1289_v5 = vrot.slane %v1288_v24, 4  ;;  %v1212_v11 = vadd.f32 %v1211_v41, %v1198_v44  ;;  %v1254_v47 = vadd.f32 %v1253_v56, %v1252_v43 }
 0x19b   :  { %v1186_v38 = vadd.f32 %v1185_v13, %v1172_v45  ;;  %v1286_v43 = vrot.slane %v1285_v50, 1  ;;  %v1250_v45 = vrot.slane %v1249_v49, 1 }
 0x19c   :  { %v1217_v8 = vpack.c.bf16 %v1212_v11, %v1184_v10  ;;  %v1290_v57 = vadd.f32 %v1289_v5, %v1288_v24  ;;  %v1255_v25 = vrot.slane %v1254_v47, 2  ;;  %v1276_v33 = vmul.f32 %v1212_v11, %v1212_v11 }
 0x19d   :  { %v1243_v52 = vmul.f32 0.0, %v1186_v38  ;;  %v1287_v13 = vadd.f32 %v1286_v43, %v1285_v50  ;;  %v1251_v14 = vadd.f32 %v1250_v45, %v1249_v49 }
 0x19e   :  { %1221 = vst [vmem:[#allocation5 + $0x8] sm:$0xff] %v1217_v8  ;;  %v1291_v23 = vrot.slane %v1290_v57, 2  ;;  %v1256_v16 = vadd.f32 %v1255_v25, %v1254_v47 }
 0x19f   :  { %v1259_v37 = vadd.f32 %v1243_v52, %v1184_v10  ;;  %v1279_v0 = vmul.f32 %v1243_v52, %v1243_v52  ;;  %v1199_v20 = vpop.f32.mrf.mxu2  ;;  %v1213_v28 = vpop.f32.mrf.mxu3 }
 0x1a0   :  { %v1200_v21 = vadd.f32 %v1199_v20, %v779_v42  ;;  %v1292_v55 = vadd.f32 %v1291_v23, %v1290_v57  ;;  %v1257_v27 = vrot.slane %v1256_v16, 1 }
 0x1a1   :  { %v1260_v58 = vrot.slane %v1259_v37, 4  ;;  %v1295_v63 = vadd.f32 %v1279_v0, %v1275_v48  ;;  %v1310_v48 = vsel %vm1309_vm10, %v1251_v14, %v1287_v13 }
 0x1a2   :  { %v1214_v29 = vadd.f32 %v1213_v28, %v1200_v21  ;;  %v1293_v9 = vrot.slane %v1292_v55, 1  ;;  %v1258_v24 = vadd.f32 %v1257_v27, %v1256_v16 }
 0x1a3   :  { %v1261_v17 = vadd.f32 %v1260_v58, %v1259_v37  ;;  %v1296_v30 = vrot.slane %v1295_v63, 4 }
 0x1a4   :  { %v1219_v62 = vpack.c.bf16 %v1214_v29, %v1186_v38  ;;  %v1244_v1 = vmul.f32 0.0, %v1214_v29  ;;  %v1294_v6 = vadd.f32 %v1293_v9, %v1292_v55 }
 0x1a5   :  { %v1297_v34 = vadd.f32 %v1296_v30, %v1295_v63  ;;  %v1262_v46 = vrot.slane %v1261_v17, 2 }
 0x1a6   :  { %1223 = vst [vmem:[#allocation5 + $0x18] sm:$0xff] %v1219_v62  ;;  %v1266_v31 = vadd.f32 %v1244_v1, %v1212_v11  ;;  %v1280_v59 = vmul.f32 %v1244_v1, %v1244_v1  ;;  %v1311_v11 = vsel %vm1309_vm10, %v1258_v24, %v1294_v6 }
 0x1a7   :  { %v1298_v40 = vrot.slane %v1297_v34, 2  ;;  %1341 = dma.vmem_to_hbm [thread:$0]  %s1334_s14, 512, %s1336_s17, [#allocation4], %s1797_s26, %s1797_s26, %s1798_s27   ;;  %v1263_v32 = vadd.f32 %v1262_v46, %v1261_v17  ;;  %v1318_v8 = vrot.slane %v1311_v11, 6 }
 0x1a8   :  { %v1267_v61 = vrot.slane %v1266_v31, 4  ;;  %v1302_v54 = vadd.f32 %v1280_v59, %v1276_v33 }
 0x1a9   :  { %v1299_v39 = vadd.f32 %v1298_v40, %v1297_v34  ;;  %v1264_v7 = vrot.slane %v1263_v32, 1  ;;  %v1322_v37 = vsel %vm1321_vm11, %v1310_v48, %v1318_v8 }
 0x1aa   :  { %v1268_v18 = vadd.f32 %v1267_v61, %v1266_v31  ;;  %v1303_v26 = vrot.slane %v1302_v54, 4 }
 0x1ab   :  { %v1300_v51 = vrot.slane %v1299_v39, 1  ;;  %v1265_v5 = vadd.f32 %v1264_v7, %v1263_v32 }
 0x1ac   :  { %v1269_v42 = vrot.slane %v1268_v18, 2  ;;  %v1304_v4 = vadd.f32 %v1303_v26, %v1302_v54 }
 0x1ad   :  { %v1301_v44 = vadd.f32 %v1300_v51, %v1299_v39 }
 0x1ae   :  { %v1270_v53 = vadd.f32 %v1269_v42, %v1268_v18  ;;  %v1305_v41 = vrot.slane %v1304_v4, 2 }
 0x1af   :  { %v1312_v56 = vsel %vm1309_vm10, %v1265_v5, %v1301_v44 }
 0x1b0   :  { %v1271_v3 = vrot.slane %v1270_v53, 1  ;;  %v1306_v12 = vadd.f32 %v1305_v41, %v1304_v4  ;;  %v1319_v57 = vrot.slane %v1312_v56, 4 }
 0x1b2   :  { %v1307_v10 = vrot.slane %v1306_v12, 1  ;;  %v1272_v35 = vadd.f32 %v1271_v3, %v1270_v53 }
 0x1b4   :  { %v1308_v38 = vadd.f32 %v1307_v10, %v1306_v12 }
 0x1b6   :  { %v1313_v52 = vsel %vm1309_vm10, %v1272_v35, %v1308_v38 }
 0x1b7   :  { %v1320_v15 = vrot.slane %v1313_v52, 2 }
 0x1b9   :  { %v1324_v0 = vsel %vm1323_vm12, %v1319_v57, %v1320_v15 }
 0x1ba   :  { %v1326_v20 = vsel %vm1325_vm13, %v1322_v37, %v1324_v0 }
 0x1bb   :  { %1328 = vst [vmem:[#allocation6] sm:$0xff] %v1326_v20 }
 0x1bc   :  { %1352 = dma.vmem_to_hbm [thread:$0]  %s1348_s18, 128, %s1350_s21, [#allocation7]  }
 0x1bd   :  { %1792 = dma.done.wait [#allocation4], 512  }
 0x1be   :  { %1793 = vsyncadd [#allocation4], 4294966784 }
 0x1bf   :  { %1794 = dma.done.wait [#allocation7], 128  }
 0x1c0   :  { %1795 = vsyncadd [#allocation7], 4294967168 }
 0x1c1   :  { %1361 = vsyncpa [#allocation3], 1 }
 0x1c2   :  { %1362 = vsyncpa [#allocation4], 1 }
 0x1c3   :  { %1363 = vsyncpa [#allocation7], 1 }

</bundles_post_ra>
